<compile_context>
chip_gen: v7x
topology: tpu7x:2x2x1
jax: 0.10.0
libtpu: 0.0.40
codegen_flags: <defaults>
</compile_context>

<pallas_src>
import functools

import jax
import jax.numpy as jnp
import numpy as np
from jax import lax
from jax.experimental import pallas as pl
from jax.experimental.pallas import tpu as pltpu

# --- hparams (from HParams) ---
ENC_DIM = 512          # enc_blstm_hidden_size (BLSTM output dim)
QUERY_DIM = 256        # query_attention_dim
ATTN_DIM = 128         # attn_dim
CONV_CH = 32           # conv_channels
KERNEL_SIZE = 31       # kernel_size
PAD = (KERNEL_SIZE - 1) // 2

_NEG_INF = -1e30


def _lsa_kernel(keys_ref, query_ref, patches_ref, wlc_ref, bl_ref, v_ref,
                out_ref, *, seq_len):
    keys_at = keys_ref[0]        # (A, Tp)  precomputed W_key @ enc^T
    query_a = query_ref[0]       # (A, 1)   precomputed W_query @ dec
    patches = patches_ref[0]     # (K, Tp)  im2col of prev_attention

    # location term with the conv folded into W_location: (A,K)@(K,Tp) + (A,1)
    loc_at = jnp.dot(wlc_ref[...], patches,
                     preferred_element_type=jnp.float32) + bl_ref[...]

    # energy (1, Tp) = v @ tanh(keys^T + query + location^T)
    h = jnp.tanh(keys_at + query_a + loc_at)                      # VPU + EUP
    energy = jnp.dot(v_ref[...], h,
                     preferred_element_type=jnp.float32)          # (1, Tp)

    # mask padded lanes, softmax over the lane (T) axis
    t_idx = lax.broadcasted_iota(jnp.int32, energy.shape, 1)
    energy = jnp.where(t_idx < seq_len, energy, _NEG_INF)
    m = jnp.max(energy, axis=-1, keepdims=True)
    e = jnp.exp(energy - m)
    s = jnp.sum(e, axis=-1, keepdims=True)
    out_ref[0] = e / s


def location_sensitive_attention(encoder_outputs, decoder_hidden, prev_attention,
                                 params):
    """encoder_outputs: (B, T, E); decoder_hidden: (B, Q); prev_attention: (B, T)."""
    B, T, E = encoder_outputs.shape
    A = params["wk"].shape[0]
    C, K = params["conv_w"].shape
    pad = (K - 1) // 2
    Tp = ((T + 127) // 128) * 128            # lane-dense T
    hp = jax.lax.Precision.HIGHEST

    # ---- hoisted, well-shaped XLA matmuls (step-invariant / batched) ----
    # keys^T (B, A, T): in an autoregressive decode loop this is per-utterance.
    keys_t = jnp.einsum("ae,bte->bat", params["wk"], encoder_outputs, precision=hp)
    # query (B, A, 1): one (B,Q)@(Q,A) matmul instead of a per-step N=1 MXU op.
    query = jnp.einsum("aq,bq->ba", params["wq"], decoder_hidden,
                       precision=hp)[:, :, None]
    # fold the 1->C conv into the location projection (constants per model).
    wlc = jnp.einsum("ac,ck->ak", params["wl"], params["conv_w"], precision=hp)
    bl = jnp.einsum("ac,c->a", params["wl"], params["conv_b"], precision=hp)[:, None]

    # im2col patches of prev_attention: (B, K, T) -- tiny (K*T*4 B per batch).
    att_pad = jnp.pad(prev_attention, ((0, 0), (pad, pad)))
    patches = jnp.stack([att_pad[:, k:k + T] for k in range(K)], axis=1)

    # pad T up to a multiple of 128 lanes (masked inside the kernel).
    if Tp != T:
        keys_t = jnp.pad(keys_t, ((0, 0), (0, 0), (0, Tp - T)))
        patches = jnp.pad(patches, ((0, 0), (0, 0), (0, Tp - T)))

    kernel = functools.partial(_lsa_kernel, seq_len=T)

    out = pl.pallas_call(
        kernel,
        out_shape=jax.ShapeDtypeStruct((B, 1, Tp), jnp.float32),
        grid_spec=pltpu.PrefetchScalarGridSpec(
            num_scalar_prefetch=0,
            grid=(B,),
            in_specs=[
                pl.BlockSpec((1, A, Tp), lambda b: (b, 0, 0)),   # keys^T
                pl.BlockSpec((1, A, 1), lambda b: (b, 0, 0)),    # query column
                pl.BlockSpec((1, K, Tp), lambda b: (b, 0, 0)),   # im2col patches
                pl.BlockSpec((A, K), lambda b: (0, 0)),          # wl @ conv_w
                pl.BlockSpec((A, 1), lambda b: (0, 0)),          # wl @ conv_b
                pl.BlockSpec((1, A), lambda b: (0, 0)),          # v
            ],
            out_specs=pl.BlockSpec((1, 1, Tp), lambda b: (b, 0, 0)),
        ),
        compiler_params=pltpu.CompilerParams(
            dimension_semantics=("parallel",),
            vmem_limit_bytes=32 * 1024 * 1024,
        ),
    )(keys_t, query, patches, wlc, bl, params["v"])

    return out[:, 0, :T]  # (B, T)


def _reference(encoder_outputs, decoder_hidden, prev_attention, params):
    """Pure-JAX reference mirroring the PyTorch forward exactly."""
    hp = jax.lax.Precision.HIGHEST
    query = jnp.einsum("bq,aq->ba", decoder_hidden, params["wq"], precision=hp)
    keys = jnp.einsum("bte,ae->bta", encoder_outputs, params["wk"], precision=hp)
    B, T = prev_attention.shape
    C, K = params["conv_w"].shape
    pad = (K - 1) // 2
    att_pad = jnp.pad(prev_attention, ((0, 0), (pad, pad)))
    patches = jnp.stack([att_pad[:, k:k + T] for k in range(K)], axis=1)   # (B, K, T)
    loc = jnp.einsum("ck,bkt->bct", params["conv_w"], patches,
                     precision=hp) + params["conv_b"][None, :, None]
    location_term = jnp.einsum("bct,ac->bta", loc, params["wl"], precision=hp)
    energy = jnp.einsum("bta,xa->btx",
                        jnp.tanh(keys + query[:, None, :] + location_term),
                        params["v"], precision=hp)[..., 0]
    return jax.nn.softmax(energy, axis=1)


def _init_params(key):
    ks = jax.random.split(key, 6)
    scale = 0.05
    return {
        "wq": scale * jax.random.normal(ks[0], (ATTN_DIM, QUERY_DIM), jnp.float32),
        "wk": scale * jax.random.normal(ks[1], (ATTN_DIM, ENC_DIM), jnp.float32),
        "conv_w": scale * jax.random.normal(ks[2], (CONV_CH, KERNEL_SIZE), jnp.float32),
        "conv_b": scale * jax.random.normal(ks[3], (CONV_CH,), jnp.float32),
        "wl": scale * jax.random.normal(ks[4], (ATTN_DIM, CONV_CH), jnp.float32),
        "v": scale * jax.random.normal(ks[5], (1, ATTN_DIM), jnp.float32),
    }


if __name__ == "__main__":
    B, T = 2, 64   # T not a multiple of 128 -> exercises pad+mask path
    key = jax.random.PRNGKey(0)
    k_enc, k_dec, k_att, k_par = jax.random.split(key, 4)

    encoder_outputs = jax.random.normal(k_enc, (B, T, ENC_DIM), jnp.float32)
    decoder_hidden = jax.random.normal(k_dec, (B, QUERY_DIM), jnp.float32)
    prev_attention = jax.nn.softmax(
        jax.random.normal(k_att, (B, T), jnp.float32), axis=1)
    params = _init_params(k_par)

    attn = location_sensitive_attention(
        encoder_outputs, decoder_hidden, prev_attention, params)
    attn = jax.block_until_ready(attn)

    ref = _reference(encoder_outputs, decoder_hidden, prev_attention, params)
    np.testing.assert_allclose(np.asarray(attn), np.asarray(ref), atol=1e-5, rtol=1e-5)
    assert attn.shape == (B, T)

    print("KERNEL_OK")
</pallas_src>

<mosaic_0001>
module attributes {stable_mosaic.version = 11 : i64} {
  func.func @_lsa_kernel(%arg0: i32, %arg1: memref<1x128x128xf32, #tpu.memory_space<vmem>>, %arg2: memref<1x128x1xf32, #tpu.memory_space<vmem>>, %arg3: memref<1x31x128xf32, #tpu.memory_space<vmem>>, %arg4: memref<128x31xf32, #tpu.memory_space<vmem>>, %arg5: memref<128x1xf32, #tpu.memory_space<vmem>>, %arg6: memref<1x128xf32, #tpu.memory_space<vmem>>, %arg7: memref<1x1x128xf32, #tpu.memory_space<vmem>>) attributes {dimension_semantics = [#tpu.dimension_semantics<parallel>], iteration_bounds = array<i64: 2>, scalar_prefetch = 0 : i64, scratch_operands = 0 : i64, tpu.core_type = #tpu.core_type<tc>, window_params = [{transform_indices = @transform_0, window_bounds = array<i64: 1, 128, 128>}, {transform_indices = @transform_1, window_bounds = array<i64: 1, 128, 1>}, {transform_indices = @transform_2, window_bounds = array<i64: 1, 31, 128>}, {pipeline_mode = #tpu.pipeline_mode<synchronous>, transform_indices = @transform_3, window_bounds = array<i64: 128, 31>}, {pipeline_mode = #tpu.pipeline_mode<synchronous>, transform_indices = @transform_4, window_bounds = array<i64: 128, 1>}, {pipeline_mode = #tpu.pipeline_mode<synchronous>, transform_indices = @transform_5, window_bounds = array<i64: 1, 128>}, {transform_indices = @transform_6, window_bounds = array<i64: 1, 1, 128>}]} {
    %c0 = arith.constant 0 : index
    %c0_0 = arith.constant 0 : index
    %c0_1 = arith.constant 0 : index
    %0 = vector.load %arg1[%c0, %c0_0, %c0_1] : memref<1x128x128xf32, #tpu.memory_space<vmem>>, vector<1x128x128xf32>
    %1 = vector.shape_cast %0 : vector<1x128x128xf32> to vector<128x128xf32>
    %c0_2 = arith.constant 0 : index
    %c0_3 = arith.constant 0 : index
    %c0_4 = arith.constant 0 : index
    %2 = vector.load %arg2[%c0_2, %c0_3, %c0_4] : memref<1x128x1xf32, #tpu.memory_space<vmem>>, vector<1x128x1xf32>
    %3 = vector.shape_cast %2 : vector<1x128x1xf32> to vector<128x1xf32>
    %c0_5 = arith.constant 0 : index
    %c0_6 = arith.constant 0 : index
    %c0_7 = arith.constant 0 : index
    %4 = vector.load %arg3[%c0_5, %c0_6, %c0_7] : memref<1x31x128xf32, #tpu.memory_space<vmem>>, vector<1x31x128xf32>
    %5 = vector.shape_cast %4 : vector<1x31x128xf32> to vector<31x128xf32>
    %c0_8 = arith.constant 0 : index
    %c0_9 = arith.constant 0 : index
    %6 = vector.load %arg4[%c0_8, %c0_9] : memref<128x31xf32, #tpu.memory_space<vmem>>, vector<128x31xf32>
    %cst = arith.constant dense<0.000000e+00> : vector<128x128xf32>
    %7 = tpu.matmul %6, %5, %cst {dimension_numbers = #tpu.dot_dimension_numbers<[1], [0], [0], [1], [0, 0, 1, 1], [], []>} : vector<128x31xf32>, vector<31x128xf32>, vector<128x128xf32> -> vector<128x128xf32>
    %c0_10 = arith.constant 0 : index
    %c0_11 = arith.constant 0 : index
    %8 = vector.load %arg5[%c0_10, %c0_11] : memref<128x1xf32, #tpu.memory_space<vmem>>, vector<128x1xf32>
    %9 = vector.broadcast %8 : vector<128x1xf32> to vector<128x128xf32>
    %10 = arith.addf %7, %9 : vector<128x128xf32>
    %11 = vector.broadcast %3 : vector<128x1xf32> to vector<128x128xf32>
    %12 = arith.addf %1, %11 : vector<128x128xf32>
    %13 = arith.addf %12, %10 : vector<128x128xf32>
    %14 = math.tanh %13 : vector<128x128xf32>
    %c0_12 = arith.constant 0 : index
    %c0_13 = arith.constant 0 : index
    %15 = vector.load %arg6[%c0_12, %c0_13] : memref<1x128xf32, #tpu.memory_space<vmem>>, vector<1x128xf32>
    %cst_14 = arith.constant dense<0.000000e+00> : vector<1x128xf32>
    %16 = tpu.matmul %15, %14, %cst_14 {dimension_numbers = #tpu.dot_dimension_numbers<[1], [0], [0], [1], [0, 0, 1, 1], [], []>} : vector<1x128xf32>, vector<128x128xf32>, vector<1x128xf32> -> vector<1x128xf32>
    %17 = tpu.iota {dimensions = array<i32: 1>} : vector<1x128xi32>
    %c64_i32 = arith.constant 64 : i32
    %18 = vector.broadcast %c64_i32 : i32 to vector<1x128xi32>
    %19 = arith.cmpi slt, %17, %18 : vector<1x128xi32>
    %cst_15 = arith.constant -1.000000e+30 : f32
    %20 = vector.broadcast %cst_15 : f32 to vector<1x128xf32>
    %21 = arith.select %19, %16, %20 : vector<1x128xi1>, vector<1x128xf32>
    %cst_16 = arith.constant dense<0xFF800000> : vector<1xf32>
    %22 = vector.multi_reduction <maximumf>, %21, %cst_16 [1] : vector<1x128xf32> to vector<1xf32>
    %23 = vector.shape_cast %22 : vector<1xf32> to vector<1x1xf32>
    %24 = vector.broadcast %23 : vector<1x1xf32> to vector<1x128xf32>
    %25 = arith.subf %21, %24 : vector<1x128xf32>
    %26 = math.exp %25 : vector<1x128xf32>
    %cst_17 = arith.constant dense<0.000000e+00> : vector<1xf32>
    %27 = vector.multi_reduction <add>, %26, %cst_17 [1] : vector<1x128xf32> to vector<1xf32>
    %28 = vector.shape_cast %27 : vector<1xf32> to vector<1x1xf32>
    %29 = vector.broadcast %28 : vector<1x1xf32> to vector<1x128xf32>
    %30 = arith.divf %26, %29 : vector<1x128xf32>
    %c0_18 = arith.constant 0 : index
    %c0_19 = arith.constant 0 : index
    %c0_20 = arith.constant 0 : index
    %31 = vector.load %arg7[%c0_18, %c0_19, %c0_20] : memref<1x1x128xf32, #tpu.memory_space<vmem>>, vector<1x1x128xf32>
    %32 = vector.shape_cast %31 : vector<1x1x128xf32> to vector<1x128xf32>
    %33 = vector.shape_cast %30 : vector<1x128xf32> to vector<1x1x128xf32>
    tpu.vector_store %arg7[%c0_18, %c0_19, %c0_20], %33 {strides = array<i32>} : memref<1x1x128xf32, #tpu.memory_space<vmem>>, vector<1x1x128xf32>,
    return
  }
  func.func @transform_0(%arg0: i32) -> (i32, i32, i32) {
    %c0_i32 = arith.constant 0 : i32
    %c0_i32_0 = arith.constant 0 : i32
    %c0_i32_1 = arith.constant 0 : i32
    return %arg0, %c0_i32, %c0_i32_0 : i32, i32, i32
  }
  func.func @transform_1(%arg0: i32) -> (i32, i32, i32) {
    %c0_i32 = arith.constant 0 : i32
    %c0_i32_0 = arith.constant 0 : i32
    %c0_i32_1 = arith.constant 0 : i32
    return %arg0, %c0_i32, %c0_i32_0 : i32, i32, i32
  }
  func.func @transform_2(%arg0: i32) -> (i32, i32, i32) {
    %c0_i32 = arith.constant 0 : i32
    %c0_i32_0 = arith.constant 0 : i32
    %c0_i32_1 = arith.constant 0 : i32
    return %arg0, %c0_i32, %c0_i32_0 : i32, i32, i32
  }
  func.func @transform_3(%arg0: i32) -> (i32, i32) {
    %c0_i32 = arith.constant 0 : i32
    %c0_i32_0 = arith.constant 0 : i32
    %c0_i32_1 = arith.constant 0 : i32
    return %c0_i32, %c0_i32_0 : i32, i32
  }
  func.func @transform_4(%arg0: i32) -> (i32, i32) {
    %c0_i32 = arith.constant 0 : i32
    %c0_i32_0 = arith.constant 0 : i32
    %c0_i32_1 = arith.constant 0 : i32
    return %c0_i32, %c0_i32_0 : i32, i32
  }
  func.func @transform_5(%arg0: i32) -> (i32, i32) {
    %c0_i32 = arith.constant 0 : i32
    %c0_i32_0 = arith.constant 0 : i32
    %c0_i32_1 = arith.constant 0 : i32
    return %c0_i32, %c0_i32_0 : i32, i32
  }
  func.func @transform_6(%arg0: i32) -> (i32, i32, i32) {
    %c0_i32 = arith.constant 0 : i32
    %c0_i32_0 = arith.constant 0 : i32
    %c0_i32_1 = arith.constant 0 : i32
    return %arg0, %c0_i32, %c0_i32_0 : i32, i32, i32
  }
}

</mosaic_0001>

<bundles_post_ra>
// kernel: tpu_custom_call.1
= control target key start
LH: loop header
LB: loop body
LE: loop exit
PB: predicated region body
PF: predicated region fallthrough
CT: control target
= control target key end

     0   :  { %11 = vsyncpa [#allocation3], 0  ;;  %s1601_s0 = inlined_call_operand.vmem [shape: f32[2,128,128], index: 0, kind: input, shape index: {}]   ;;  %s1602_s1 = inlined_call_operand.vmem [shape: f32[2,128,1], index: 1, kind: input, shape index: {}]   ;;  %s1603_s2 = inlined_call_operand.vmem [shape: f32[2,31,128], index: 2, kind: input, shape index: {}]   ;;  %s1604_s3 = inlined_call_operand.vmem [shape: f32[128,31], index: 3, kind: input, shape index: {}]   ;;  %s1605_s4 = inlined_call_operand.vmem [shape: f32[128,1], index: 4, kind: input, shape index: {}]   ;;  %s1606_s5 = inlined_call_operand.vmem [shape: f32[1,128], index: 5, kind: input, shape index: {}]   ;;  %s1607_s6 = inlined_call_operand.hbm [shape: f32[2,1,128], index: 6, kind: output, shape index: {}]  }
   0x1   :  { %13 = vsyncpa [#allocation3 + $0x1], 0  ;;  %s1301_s21 = smov 0   ;;  %s1303_s22 = smov 0  }
   0x2   :  { %s1305_s23 = smov 0   ;;  %s1307_s24 = smov 0  }
   0x3 LB: > { %s1322_s25 = sadd.s32 4294967295, %s1258_s24   ;;  %s943_s26 = sadd.s32 4294967294, %s1258_s24   ;;  %s1258_s24 = sphi %s1307_s24, %s1613_s24   ;;  %s1254_s23 = sphi %s1305_s23, %s1612_s23   ;;  %s1250_s22 = sphi %s1303_s22, %s1611_s22   ;;  %s1246_s21 = sphi %s1301_s21, %s1610_s21  }
   0x4   : > { %s1326_s27 = sadd.s32 1, %s1258_s24   ;;  %s167_s28 = sadd.s32 1, %s1254_s23 }
   0x5   : > { %s164_s29 = ssub.s32 %s1258_s24, %s1326_s27  ;;  %p177_p0 = scmp.ne.s32.totalorder %s1254_s23, %s1250_s22 }
   0x6   : > { %p165_p1 = scmp.eq.s32.totalorder %s164_s29, 0  ;;  %p178_p2 = scmp.eq.s32.totalorder %s1322_s25, 1 }
   0x7   : > { %p183_p3 = scmp.ne.s32.totalorder %s1250_s22, %s1246_s21  ;;  %p184_p4 = scmp.eq.s32.totalorder %s943_s26, 1 }
   0x8   : > { %s1337_s30 = scalar_select %p165_p1, %s1254_s23, %s167_s28  }
   0x9   : > { %p1339_p5 = por %p178_p2, %p177_p0  ;;  %p1343_p6 = por %p184_p4, %p183_p3 }
   0xa   : > { %p946_p7 = scmp.ge.s32.totalorder %s1258_s24, 1  ;;  %p235_p8 = scmp.lt.s32.totalorder %s1258_s24, 3 }
   0xc   : > { %p236_p9 = pnand %p946_p7, %p235_p8 }
   0xd   : > { %p274_p10 = scmp.lt.s32.totalorder (!%p236_p9), %s1322_s25, 1  ;;  %v341_v0 = vld [vmem:[%s1605_s4] sm:$0xff] (!%p236_p9)  ;;  %v1260_v1 = vmov (!%p236_p9), 0   ;;  %vm437_vm0 = vcmask (!%p236_p9), 252928   ;;  %v342_v3 = vld [vmem:[%s1605_s4 + $0x8] sm:$0xff] (!%p236_p9)  ;;  %vm486_vm1 = vcmask (!%p236_p9), 1046528  }
   0xe   : > { %239 = sbr.rel (%p236_p9) target bundleno = 839 (0x347), region = 44  ;;  %1159 = vset.pattern.permute.xlu1 (!%p236_p9), %v1260_v1  ;;  %1158 = vset.pattern.permute.xlu0 (!%p236_p9), %v1260_v1  ;;  %v325_v2 = vld [vmem:[%s1604_s3] sm:$0xff] (!%p236_p9)  ;;  %v343_v5 = vld [vmem:[%s1605_s4 + $0x10] sm:$0xff] (!%p236_p9)  ;;  %vm1261_vm2 = vmmov (!%p236_p9), 1   ;;  %v344_v14 = vld [vmem:[%s1605_s4 + $0x18] sm:$0xff] (!%p236_p9)  ;;  %v1262_v55 = vmov (!%p236_p9), 0.0|0.0  }
   0xf   : > { %359 = vperm.xlu0 (!%p236_p9), %1158, %v341_v0   ;;  %1021 = vmatprep.mubr.msk.f32.mxu0 (!%p236_p9), %vm437_vm0, %v325_v2  ;;  %vm1085_vm3 = vmpackc.low (!%p236_p9), %vm486_vm1, %vm1261_vm2  ;;  %v326_v15 = vld [vmem:[%s1604_s3 + $0x8] sm:$0xff] (!%p236_p9)  ;;  %v345_v16 = vld [vmem:[%s1605_s4 + $0x20] sm:$0xff] (!%p236_p9)  ;;  %vm1263_vm4 = vmmov (!%p236_p9), 0   ;;  %v1264_v56 = vmov (!%p236_p9), 0.0   ;;  %vm838_vm6 = vcmask (!%p236_p9), 1040384   ;;  %s272_s9 = sand.u32 (!%p236_p9), 1, %s1250_s22  }
  0x10   : > { %v327_v17 = vld [vmem:[%s1604_s3 + $0x10] sm:$0xff] (!%p236_p9)  ;;  %v328_v19 = vld [vmem:[%s1604_s3 + $0x18] sm:$0xff] (!%p236_p9)  ;;  %v329_v21 = vld [vmem:[%s1604_s3 + $0x20] sm:$0xff] (!%p236_p9)  ;;  %1090 = vmatprep.subr.bf16.mxu1 (!%p236_p9), %v1262_v55  ;;  %1077 = vmatprep.mubr.msk.f32.mxu1 (!%p236_p9), %vm1263_vm4, %v1264_v56  ;;  %s970_s10 = sshll.u32 (!%p236_p9), %s1322_s25, 4  ;;  %s273_s11 = scalar_lea.vmem (!%p236_p9), [#allocation2], %s272_s9 }
  0x11   : > { %v346_v22 = vld [vmem:[%s1605_s4 + $0x28] sm:$0xff] (!%p236_p9)  ;;  %v347_v24 = vld [vmem:[%s1605_s4 + $0x30] sm:$0xff] (!%p236_p9)  ;;  %v332_v27 = vld [vmem:[%s1604_s3 + $0x38] sm:$0xff] (!%p236_p9)  ;;  %s864_s12 = sshll.u32 (!%p236_p9), %s273_s11, 4  ;;  %s852_s18 = scalar_lea.sflag (!%p236_p9), [#allocation3], %s272_s9  ;;  %s1561_s12 = int_to_ptr.vmem [resolvable:$true] %s864_s12 }
  0x12   : > { %v330_v23 = vld [vmem:[%s1604_s3 + $0x28] sm:$0xff] (!%p236_p9)  ;;  %v331_v25 = vld [vmem:[%s1604_s3 + $0x30] sm:$0xff] (!%p236_p9)  ;;  %v333_v29 = vld [vmem:[%s1604_s3 + $0x40] sm:$0xff] (!%p236_p9)  ;;  %s1196_s19 = scalar_lea.vmem (!%p236_p9), %s1561_s12, 16 }
  0x13   : > { %364 = vperm.xlu0 (!%p236_p9), %1158, %v342_v3   ;;  %v348_v30 = vld [vmem:[%s1605_s4 + $0x38] sm:$0xff] (!%p236_p9)  ;;  %v334_v31 = vld [vmem:[%s1604_s3 + $0x48] sm:$0xff] (!%p236_p9)  ;;  %v349_v32 = vld [vmem:[%s1605_s4 + $0x40] sm:$0xff] (!%p236_p9)  ;;  %p1197_p11 = scmp.ne.s32.totalorder (!%p236_p9), %s1561_s12, %s1196_s19 }
  0x14   : > { %v335_v33 = vld [vmem:[%s1604_s3 + $0x50] sm:$0xff] (!%p236_p9)  ;;  %v336_v35 = vld [vmem:[%s1604_s3 + $0x58] sm:$0xff] (!%p236_p9)  ;;  %v337_v37 = vld [vmem:[%s1604_s3 + $0x60] sm:$0xff] (!%p236_p9) }
  0x15   : > { %s1357_s13 = scalar_select %p274_p10, %s1322_s25, 1  ;;  %v350_v38 = vld [vmem:[%s1605_s4 + $0x48] sm:$0xff]  ;;  %v351_v40 = vld [vmem:[%s1605_s4 + $0x50] sm:$0xff]  ;;  %v340_v43 = vld [vmem:[%s1604_s3 + $0x78] sm:$0xff] }
  0x16   : > { %v338_v39 = vld [vmem:[%s1604_s3 + $0x68] sm:$0xff]  ;;  %v339_v41 = vld [vmem:[%s1604_s3 + $0x70] sm:$0xff]  ;;  %v352_v45 = vld [vmem:[%s1605_s4 + $0x58] sm:$0xff]  ;;  %p1198_p12 = pnand %p1197_p11, %p1339_p5  ;;  %s1265_s25 = smov [#allocation2]  }
  0x17   : > { %s973_s16 = sshll.u32 %s1357_s13, 7  ;;  %s975_s17 = sshll.u32 %s1357_s13, 5  ;;  %369 = vperm.xlu0 %1158, %v343_v5   ;;  %v353_v46 = vld [vmem:[%s1605_s4 + $0x60] sm:$0xff]  ;;  %v354_v49 = vld [vmem:[%s1605_s4 + $0x68] sm:$0xff]  ;;  %v355_v50 = vld [vmem:[%s1605_s4 + $0x70] sm:$0xff] }
  0x18   : > { %s1370_s20 = scalar_lea.vmem %s1602_s1, %s973_s16  ;;  %s288_s29 = scalar_lea.vmem %s1603_s2, %s975_s17  ;;  %v356_v53 = vld [vmem:[%s1605_s4 + $0x78] sm:$0xff] }
  0x19   : > { %v305_v4 = vld [vmem:[%s1370_s20] sm:$0xff]  ;;  %v322_v7 = vld [vmem:[%s288_s29 + $0x8] sm:$0xff]  ;;  %v323_v8 = vld [vmem:[%s288_s29 + $0x10] sm:$0xff]  ;;  %s1559_s17 = scalar_lea.hbm %s1607_s6, %s970_s10  ;;  %p1199_p13 = pneg %p1198_p12 }
  0x1a   : > { %v321_v6 = vld [vmem:[%s288_s29] sm:$0xff]  ;;  %637 = vperm.xlu1 %1159, %v305_v4   ;;  %v324_v10 = vld [vmem:[%s288_s29 + $0x18] sm:$0x7f]  ;;  %v306_v11 = vld [vmem:[%s1370_s20 + $0x8] sm:$0xff]  ;;  %s1505_s29 = scalar_lea.vmem %s1601_s0, %s973_s16  ;;  %s1200_s26 = sshll.u32 %s1265_s25, 4  ;;  %s1201_s26 = int_to_ptr.vmem [resolvable:$false] %s1200_s26 }
  0x1b   : > { %v1080_v9 = vpack.c.bf16 %v322_v7, %v321_v6  ;;  %v1084_v12 = vpack.c.bf16 %v324_v10, %v323_v8  ;;  %v307_v13 = vld [vmem:[%s1370_s20 + $0x10] sm:$0xff]  ;;  %v308_v18 = vld [vmem:[%s1370_s20 + $0x18] sm:$0xff]  ;;  %v309_v20 = vld [vmem:[%s1370_s20 + $0x20] sm:$0xff]  ;;  %p1203_p0 = scmp.lt.s32.totalorder %s1561_s12, %s1201_s26 }
  0x1c   : > { %647 = vperm.xlu0 %1158, %v307_v13   ;;  %v310_v26 = vld [vmem:[%s1370_s20 + $0x28] sm:$0xff]  ;;  %v311_v28 = vld [vmem:[%s1370_s20 + $0x30] sm:$0xff]  ;;  %v312_v34 = vld [vmem:[%s1370_s20 + $0x38] sm:$0xff] }
  0x1d   : > { %1081 = vmatprep.subr.bf16.mxu0 %v1080_v9  ;;  %v313_v36 = vld [vmem:[%s1370_s20 + $0x40] sm:$0xff]  ;;  %v314_v42 = vld [vmem:[%s1370_s20 + $0x48] sm:$0xff]  ;;  %v315_v44 = vld [vmem:[%s1370_s20 + $0x50] sm:$0xff] }
  0x1e   : > { %1083 = vmatpush3.bf16.msra.mxu0 %v1080_v9  ;;  %642 = vperm.xlu1 %1159, %v306_v11   ;;  %v316_v47 = vld [vmem:[%s1370_s20 + $0x58] sm:$0xff]  ;;  %v317_v48 = vld [vmem:[%s1370_s20 + $0x60] sm:$0xff]  ;;  %v318_v51 = vld [vmem:[%s1370_s20 + $0x68] sm:$0xff] }
  0x1f   : > { %1086 = vmatprep.subr.msk.bf16.mxu0 %vm1085_vm3, %v1084_v12  ;;  %v319_v52 = vld [vmem:[%s1370_s20 + $0x70] sm:$0xff]  ;;  %v320_v54 = vld [vmem:[%s1370_s20 + $0x78] sm:$0xff]  ;;  %s1202_s20 = scalar_lea.vmem %s1201_s26, 32 }
  0x20   : > { %379 = vperm.xlu0 %1158, %v345_v16   ;;  %v289_v16 = vld [vmem:[%s1505_s29] sm:$0xff]  ;;  %p1204_p1 = scmp.lt.s32.totalorder %s1202_s20, %s1196_s19 }
  0x22   : > { %1089 = vmatpush3.bf16.msk.msra.mxu0 %vm1085_vm3, %v1084_v12  ;;  %374 = vperm.xlu1 %1159, %v344_v14   ;;  %p1205_p2 = por %p1204_p1, %p1203_p0 }
  0x24   : > { %657 = vperm.xlu0 %1158, %v309_v20   ;;  %p1206_p3 = pnand %p1205_p2, %p1199_p13 }
  0x25   : > { %1022 = vmatmul.mubr.msk.f32.vlgmr.msra.gmra.mrb[0].mxu0 %vm437_vm0, %v326_v15  ;;  %v290_v15 = vld [vmem:[%s1505_s29 + $0x8] sm:$0xff] }
  0x26   : > { %1024 = vmatprep.mubr.msk.f32.mxu0 %vm437_vm0, %v327_v17  ;;  %652 = vperm.xlu1 %1159, %v308_v18  }
  0x28   : > { %389 = vperm.xlu0 %1158, %v347_v24  }
  0x29   : > { %1025 = vmatmul.mubr.msk.f32.gmra.mrb[2].mxu0 %vm437_vm0, %v328_v19 }
  0x2a   : > { %1027 = vmatprep.mubr.msk.f32.mxu0 %vm437_vm0, %v329_v21  ;;  %384 = vperm.xlu1 %1159, %v346_v22   ;;  %v292_v22 = vld [vmem:[%s1505_s29 + $0x18] sm:$0xff] }
  0x2c   : > { %667 = vperm.xlu0 %1158, %v311_v28  }
  0x2d   : > { %1028 = vmatmul.mubr.msk.f32.gmra.mrb[4].mxu0 %vm437_vm0, %v330_v23 }
  0x2e   : > { %1030 = vmatprep.mubr.msk.f32.mxu0 %vm437_vm0, %v331_v25  ;;  %662 = vperm.xlu1 %1159, %v310_v26   ;;  %v291_v25 = vld [vmem:[%s1505_s29 + $0x10] sm:$0xff] }
  0x30   : > { %399 = vperm.xlu0 %1158, %v349_v32  }
  0x31   : > { %1031 = vmatmul.mubr.msk.f32.gmra.mrb[6].mxu0 %vm437_vm0, %v332_v27 }
  0x32   : > { %1033 = vmatprep.mubr.msk.f32.mxu0 %vm437_vm0, %v333_v29  ;;  %394 = vperm.xlu1 %1159, %v348_v30  }
  0x34   : > { %677 = vperm.xlu0 %1158, %v313_v36   ;;  %v293_v36 = vld [vmem:[%s1505_s29 + $0x20] sm:$0xff] }
  0x35   : > { %1034 = vmatmul.mubr.msk.f32.gmra.mrb[8].mxu0 %vm437_vm0, %v334_v31 }
  0x36   : > { %1036 = vmatprep.mubr.msk.f32.mxu0 %vm437_vm0, %v335_v33  ;;  %672 = vperm.xlu1 %1159, %v312_v34   ;;  %v294_v34 = vld [vmem:[%s1505_s29 + $0x28] sm:$0xff] }
  0x38   : > { %409 = vperm.xlu0 %1158, %v351_v40  }
  0x39   : > { %1037 = vmatmul.mubr.msk.f32.gmra.mrb[10].mxu0 %vm437_vm0, %v336_v35 }
  0x3a   : > { %1039 = vmatprep.mubr.msk.f32.mxu0 %vm437_vm0, %v337_v37  ;;  %404 = vperm.xlu1 %1159, %v350_v38  }
  0x3c   : > { %687 = vperm.xlu0 %1158, %v315_v44  }
  0x3d   : > { %1040 = vmatmul.mubr.msk.f32.gmra.mrb[12].mxu0 %vm437_vm0, %v338_v39 }
  0x3e   : > { %1042 = vmatprep.mubr.msk.f32.mxu0 %vm437_vm0, %v339_v41  ;;  %682 = vperm.xlu1 %1159, %v314_v42  }
  0x40   : > { %419 = vperm.xlu0 %1158, %v353_v46   ;;  %v296_v46 = vld [vmem:[%s1505_s29 + $0x38] sm:$0xff] }
  0x41   : > { %1043 = vmatmul.mubr.msk.f32.gmra.mrb[14].mxu0 %vm437_vm0, %v340_v43 }
  0x42   : > { %414 = vperm.xlu1 %1159, %v352_v45  }
  0x44   : > { %697 = vperm.xlu0 %1158, %v317_v48   ;;  %v295_v48 = vld [vmem:[%s1505_s29 + $0x30] sm:$0xff] }
  0x46   : > { %692 = vperm.xlu1 %1159, %v316_v47  }
  0x48   : > { %429 = vperm.xlu0 %1158, %v355_v50  }
  0x4a   : > { %424 = vperm.xlu1 %1159, %v354_v49  }
  0x4c   : > { %707 = vperm.xlu0 %1158, %v319_v52  }
  0x4e   : > { %702 = vperm.xlu1 %1159, %v318_v51  }
  0x52   : > { %434 = vperm.xlu1 %1159, %v356_v53  }
  0x56   : > { %712 = vperm.xlu1 %1159, %v320_v54  }
  0x8e   : > { %v360_v58 = vpop.permute.xlu0 %359 }
  0x92   : > { %v365_v60 = vpop.permute.xlu0 %364 }
  0x96   : > { %v370_v62 = vpop.permute.xlu0 %369 }
  0x99   : > { %v638_v57 = vpop.permute.xlu1 %637 }
  0x9a   : > { %v715_v21 = vadd.f32 %v638_v57, %v289_v16  ;;  %v298_v57 = vld [vmem:[%s1505_s29 + $0x48] sm:$0xff] }
  0x9b   : > { %v648_v0 = vpop.permute.xlu0 %647 }
  0x9c   : > { %v717_v33 = vadd.f32 %v648_v0, %v291_v25 }
  0x9d   : > { %v643_v59 = vpop.permute.xlu1 %642 }
  0x9e   : > { %v716_v18 = vadd.f32 %v643_v59, %v290_v15  ;;  %v300_v15 = vld [vmem:[%s1505_s29 + $0x58] sm:$0xff] }
  0x9f   : > { %v380_v2 = vpop.permute.xlu0 %379 }
  0xa1   : > { %v375_v61 = vpop.permute.xlu1 %374 }
  0xa3   : > { %v658_v4 = vpop.permute.xlu0 %657 }
  0xa4   : > { %v719_v45 = vadd.f32 %v658_v4, %v293_v36 }
  0xa5   : > { %v653_v63 = vpop.permute.xlu1 %652 }
  0xa6   : > { %v718_v30 = vadd.f32 %v653_v63, %v292_v22 }
  0xa7   : > { %v390_v6 = vpop.permute.xlu0 %389 }
  0xa9   : > { %v385_v1 = vpop.permute.xlu1 %384 }
  0xab   : > { %v668_v8 = vpop.permute.xlu0 %667 }
  0xac   : > { %v721_v56 = vadd.f32 %v668_v8, %v295_v48 }
  0xad   : > { %v663_v3 = vpop.permute.xlu1 %662 }
  0xae   : > { %v720_v41 = vadd.f32 %v663_v3, %v294_v34 }
  0xaf   : > { %v1496_v10 = vpop.permute.xlu0 %399 }
  0xb1   : > { %v395_v5 = vpop.permute.xlu1 %394 }
  0xb3   : > { %v1498_v12 = vpop.permute.xlu0 %677 }
  0xb5   : > { %v673_v7 = vpop.permute.xlu1 %672 }
  0xb6   : > { %v722_v52 = vadd.f32 %v673_v7, %v296_v46 }
  0xb7   : > { %v1509_v14 = vpop.permute.xlu0 %409 }
  0xb9   : > { %v1494_v9 = vpop.permute.xlu1 %404 }
  0xbb   : > { %v1517_v26 = vpop.permute.xlu0 %687 }
  0xbd   : > { %v683_v11 = vpop.permute.xlu1 %682 }
  0xbe   : > { %v724_v3 = vadd.f32 %v683_v11, %v298_v57 }
  0xbf   : > { %v1523_v42 = vpop.permute.xlu0 %419 }
  0xc1   : > { %v1507_v13 = vpop.permute.xlu1 %414 }
  0xc5   : > { %v1514_v23 = vpop.permute.xlu1 %692 }
  0xc9   : > { %v1521_v38 = vpop.permute.xlu1 %424 }
  0xf8   : > { %v1023_v17 = vpop.f32.mrb[0].mxu0 }
  0xf9   : > { %v562_v19 = vadd.f32 %v1023_v17, %v365_v60  ;;  %v556_v20 = vpop.f32.mrb[1].mxu0  ;;  %v299_v17 = vld [vmem:[%s1505_s29 + $0x50] sm:$0xff] }
  0xfa   : > { %v557_v24 = vadd.f32 %v556_v20, %v360_v58  ;;  %v703_v58 = vpop.permute.xlu1 %702  ;;  %v725_v25 = vadd.f32 %v1517_v26, %v299_v17 }
  0xfb   : > { %v732_v27 = vadd.f32 %v716_v18, %v562_v19 }
  0xfc   : > { %v731_v28 = vadd.f32 %v715_v21, %v557_v24  ;;  %v1026_v29 = vpop.f32.mrb[2].mxu0 }
  0xfd   : > { %1160 = vtanh.f32 %v732_v27  ;;  %v572_v31 = vadd.f32 %v1026_v29, %v375_v61  ;;  %v566_v32 = vpop.f32.mrb[3].mxu0  ;;  %v297_v61 = vld [vmem:[%s1505_s29 + $0x40] sm:$0xff]  ;;  %v302_v27 = vld [vmem:[%s1505_s29 + $0x68] sm:$0xff] }
  0xfe   : > { %1162 = vtanh.f32 %v731_v28  ;;  %v567_v35 = vadd.f32 %v566_v32, %v370_v62  ;;  %v698_v62 = vpop.permute.xlu0 %697  ;;  %v723_v8 = vadd.f32 %v1498_v12, %v297_v61  ;;  %v435_v20 = vpop.permute.xlu1 %434 }
  0xff   : > { %v734_v37 = vadd.f32 %v718_v30, %v572_v31  ;;  %v301_v30 = vld [vmem:[%s1505_s29 + $0x60] sm:$0xff] }
 0x100   : > { %v733_v39 = vadd.f32 %v717_v33, %v567_v35  ;;  %v1029_v40 = vpop.f32.mrb[4].mxu0  ;;  %v727_v36 = vadd.f32 %v698_v62, %v301_v30 }
 0x101   : > { %1164 = vtanh.f32 %v734_v37  ;;  %v582_v43 = vadd.f32 %v1029_v40, %v385_v1  ;;  %v576_v44 = vpop.f32.mrb[5].mxu0 }
 0x102   : > { %1166 = vtanh.f32 %v733_v39  ;;  %v577_v47 = vadd.f32 %v576_v44, %v380_v2  ;;  %v430_v22 = vpop.permute.xlu0 %429  ;;  %v713_v37 = vpop.permute.xlu1 %712 }
 0x103   : > { %v736_v49 = vadd.f32 %v720_v41, %v582_v43  ;;  %v303_v43 = vld [vmem:[%s1505_s29 + $0x70] sm:$0xff] }
 0x104   : > { %v735_v50 = vadd.f32 %v719_v45, %v577_v47  ;;  %v1032_v51 = vpop.f32.mrb[6].mxu0 }
 0x105   : > { %1168 = vtanh.f32 %v736_v49  ;;  %v592_v53 = vadd.f32 %v1032_v51, %v395_v5  ;;  %v586_v54 = vpop.f32.mrb[7].mxu0 }
 0x106   : > { %1170 = vtanh.f32 %v735_v50  ;;  %v587_v59 = vadd.f32 %v586_v54, %v390_v6  ;;  %v708_v41 = vpop.permute.xlu0 %707 }
 0x107   : > { %v1161_v60 = vpop.eup %1160  ;;  %v738_v63 = vadd.f32 %v722_v52, %v592_v53  ;;  %v729_v51 = vadd.f32 %v708_v41, %v303_v43 }
 0x108   : > { %v1163_v0 = vpop.eup %1162  ;;  %v737_v1 = vadd.f32 %v721_v56, %v587_v59  ;;  %v1035_v2 = vpop.f32.mrb[8].mxu0 }
 0x109   : > { %1172 = vtanh.f32 %v738_v63  ;;  %v602_v4 = vadd.f32 %v1035_v2, %v1494_v9  ;;  %v596_v5 = vpop.f32.mrb[9].mxu0  ;;  %v1091_v7 = vpack.c.bf16 %v1161_v60, %v1163_v0  ;;  %v726_v9 = vadd.f32 %v1514_v23, %v300_v15 }
 0x10a   : > { %1174 = vtanh.f32 %v737_v1  ;;  %v597_v6 = vadd.f32 %v596_v5, %v1496_v10 }
 0x10b   : > { %v1165_v16 = vpop.eup %1164  ;;  %v740_v18 = vadd.f32 %v724_v3, %v602_v4  ;;  %1092 = vmatpush3.bf16.msra.mxu1 %v1091_v7  ;;  %v763_v3 = vld [vmem:[%s1606_s5] sm:$0x1]  ;;  %v834_v4 = vlaneseq }
 0x10c   : > { %v1167_v19 = vpop.eup %1166  ;;  %v739_v11 = vadd.f32 %v723_v8, %v597_v6  ;;  %v1038_v21 = vpop.f32.mrb[10].mxu0  ;;  %1093 = vmatprep.subr.bf16.mxu1 %v1262_v55 }
 0x10d   : > { %1176 = vtanh.f32 %v740_v18  ;;  %v612_v12 = vadd.f32 %v1038_v21, %v1507_v13  ;;  %v606_v24 = vpop.f32.mrb[11].mxu0  ;;  %v1094_v10 = vpack.c.bf16 %v1165_v16, %v1167_v19  ;;  %v728_v13 = vadd.f32 %v703_v58, %v302_v27 }
 0x10e   : > { %1178 = vtanh.f32 %v739_v11  ;;  %v607_v28 = vadd.f32 %v606_v24, %v1509_v14  ;;  %v304_v14 = vld [vmem:[%s1505_s29 + $0x78] sm:$0xff]  ;;  %v835_v5 = vand.u32 127, %v834_v4 }
 0x10f   : > { %v1169_v29 = vpop.eup %1168  ;;  %v742_v31 = vadd.f32 %v726_v9, %v612_v12  ;;  %1095 = vmatpush3.bf16.msra.mxu1 %v1094_v10  ;;  %v730_v48 = vadd.f32 %v713_v37, %v304_v14 }
 0x110   : > { %v1171_v32 = vpop.eup %1170  ;;  %v741_v23 = vadd.f32 %v725_v25, %v607_v28  ;;  %v1041_v33 = vpop.f32.mrb[12].mxu0  ;;  %1096 = vmatprep.subr.bf16.mxu1 %v1262_v55  ;;  %vm836_vm5 = vcmp.lt.s32.totalorder %v835_v5, 64 }
 0x111   : > { %1180 = vtanh.f32 %v742_v31  ;;  %v622_v34 = vadd.f32 %v1041_v33, %v1521_v38  ;;  %v616_v26 = vpop.f32.mrb[13].mxu0  ;;  %v1097_v35 = vpack.c.bf16 %v1169_v29, %v1171_v32 }
 0x112   : > { %1182 = vtanh.f32 %v741_v23  ;;  %v617_v39 = vadd.f32 %v616_v26, %v1523_v42 }
 0x113   : > { %v1173_v40 = vpop.eup %1172  ;;  %v744_v44 = vadd.f32 %v728_v13, %v622_v34  ;;  %1098 = vmatpush3.bf16.msra.mxu1 %v1097_v35 }
 0x114   : > { %v1175_v45 = vpop.eup %1174  ;;  %v743_v46 = vadd.f32 %v727_v36, %v617_v39  ;;  %v1044_v47 = vpop.f32.mrb[14].mxu0  ;;  %1099 = vmatprep.subr.bf16.mxu1 %v1262_v55 }
 0x115   : > { %1184 = vtanh.f32 %v744_v44  ;;  %v632_v38 = vadd.f32 %v1044_v47, %v435_v20  ;;  %v626_v49 = vpop.f32.mrb[15].mxu0  ;;  %v1100_v50 = vpack.c.bf16 %v1173_v40, %v1175_v45 }
 0x116   : > { %1186 = vtanh.f32 %v743_v46  ;;  %v627_v52 = vadd.f32 %v626_v49, %v430_v22 }
 0x117   : > { %v1177_v53 = vpop.eup %1176  ;;  %v746_v42 = vadd.f32 %v730_v48, %v632_v38  ;;  %1101 = vmatpush3.bf16.msra.mxu1 %v1100_v50 }
 0x118   : > { %v1179_v54 = vpop.eup %1178  ;;  %v745_v56 = vadd.f32 %v729_v51, %v627_v52  ;;  %1102 = vmatprep.subr.bf16.mxu1 %v1262_v55 }
 0x119   : > { %1188 = vtanh.f32 %v746_v42  ;;  %v1103_v57 = vpack.c.bf16 %v1177_v53, %v1179_v54 }
 0x11a   : > { %1190 = vtanh.f32 %v745_v56 }
 0x11b   : > { %v1181_v58 = vpop.eup %1180  ;;  %1104 = vmatpush3.bf16.msra.mxu1 %v1103_v57 }
 0x11c   : > { %v1183_v59 = vpop.eup %1182  ;;  %1105 = vmatprep.subr.bf16.mxu1 %v1262_v55 }
 0x11d   : > { %v1106_v60 = vpack.c.bf16 %v1181_v58, %v1183_v59 }
 0x11f   : > { %v1185_v61 = vpop.eup %1184  ;;  %1107 = vmatpush3.bf16.msra.mxu1 %v1106_v60 }
 0x120   : > { %v1187_v62 = vpop.eup %1186  ;;  %1108 = vmatprep.subr.bf16.mxu1 %v1262_v55 }
 0x121   : > { %v1109_v63 = vpack.c.bf16 %v1185_v61, %v1187_v62 }
 0x123   : > { %v1189_v0 = vpop.eup %1188  ;;  %1110 = vmatpush3.bf16.msra.mxu1 %v1109_v63 }
 0x124   : > { %v1191_v1 = vpop.eup %1190  ;;  %1111 = vmatprep.subr.bf16.mxu1 %v1262_v55 }
 0x125   : > { %v1112_v2 = vpack.c.bf16 %v1189_v0, %v1191_v1 }
 0x127   : > { %1113 = vmatpush3.bf16.msra.mxu1 %v1112_v2 }
 0x12a   : > { %1078 = vmatmul.mubr.f32.vlgmr.msra.gmra.mrb[0].mxu1 %v763_v3 }
 0x1fd   : > { %v830_v7 = vpop.f32.mrb[0].mxu1 }
 0x1fe   : > { %v837_v8 = vsel %vm836_vm5, %v830_v7, -1e+30  ;;  %v1079_v15 = vpop.f32.mrb[1].mxu1 }
 0x1ff   : > { %v839_v6 = vsel %vm838_vm6, %v837_v8, -inf }
 0x200   : > { %840 = vmax.xlane.f32.xlu0 %v839_v6 }
 0x28d   : > { %v841_v16 = vpop.xlane.xlu0 %840 }
 0x28e   : > { %v842_v55 = vsub.f32 %v837_v8, %v841_v16 }
 0x290   : > { %v843_v17 = vmul.f32 1.442695, %v842_v55 }
 0x292   : > { %1192 = vpow2.f32 %v843_v17 }
 0x29c   : > { %v1193_v18 = vpop.eup %1192 }
 0x29d   : > { %v845_v19 = vsel %vm838_vm6, %v1193_v18, 0.0 }
 0x29e   : > { %846 = vadd.xlane.f32.xlu1 %v845_v19 }
 0x32b   : > { %v847_v20 = vpop.xlane.xlu1 %846 }
 0x32c   : > { %1194 = vrcp.f32 %v847_v20 }
 0x336   : > { %v1195_v11 = vpop.eup %1194 }
 0x337   : > { %v849_v21 = vmul.f32 %v1195_v11, %v1193_v18 }
 0x339   : > { %850 = vst [vmem:[%s273_s11] sm:$0x1] %v849_v21 }
 0x33a   : > { %1209 = shalt.err (!%p1206_p3)
}
 0x33b   : > { %s1210_s28 = scalar_lea.hbm %s1559_s17, 16  ;;  %s1214_s16 = scalar_lea.hbm %s1607_s6, 32 }
 0x33c   : > { %p1211_p4 = scmp.ne.s32.totalorder %s1559_s17, %s1210_s28  ;;  %p1215_p9 = scmp.lt.u32.totalorder %s1559_s17, %s1607_s6 }
 0x33d   : > { %p1216_p10 = scmp.lt.u32.totalorder %s1214_s16, %s1210_s28  ;;  %p1218_p12 = scmp.lt.u32.totalorder %s1210_s28, %s1559_s17 }
 0x33e   : > { %p1212_p7 = pnand %p1211_p4, %p1339_p5 }
 0x33f   : > { %p1217_p11 = por %p1216_p10, %p1215_p9 }
 0x340   : > { %p1213_p8 = pneg %p1212_p7 }
 0x341   : > { %p1219_p13 = por %p1218_p12, %p1217_p11 }
 0x343   : > { %p1220_p0 = pnand %p1219_p13, %p1213_p8 }
 0x345   : > { %1223 = shalt.err (!%p1220_p0)
}
 0x346   : > { %1114 = dma.vmem_to_hbm [thread:$0]  (%p1339_p5), %s1561_s12, 16, %s1559_s17, %s852_s18  }
 0x347 PF: > { %p1120_p1 = scmp.ge.s32.totalorder %s1258_s24, 2  ;;  %s876_s11 = sand.u32 1, %s1246_s21  }
 0x348   : > { %s877_s14 = scalar_lea.sflag [#allocation3], %s876_s11 }
 0x349   : > { %p1117_p2 = pnand %p1120_p1, %p1343_p6 }
 0x34b   : > { %1241 = dma.done.wait (!%p1117_p2), %s877_s14, 16  }
 0x34c   : > { %1243 = vsyncadd (!%p1117_p2), %s877_s14, 4294967280  ;;  %p16_p3 = scmp.ge.s32.totalorder %s1326_s27, 4   ;;  %s1610_s21 = smov %s1250_s22 }
 0x34d   : > { %s1611_s22 = smov %s1254_s23  ;;  %s1612_s23 = smov %s1337_s30 }
 0x34e   : > { %s1613_s24 = smov %s1326_s27  ;;  %18 = sbr.rel (!%p16_p3) target bundleno = 3 (0x3), region = 85 }
 0x355   :  { %881 = vsyncpa [#allocation3], 1 }
 0x356   :  { %883 = vsyncpa [#allocation3 + $0x1], 1 }

</bundles_post_ra>
